<compile_context>
chip_gen: v6e
topology: v6e:2x2x1
jax: 0.10.0
libtpu: 0.0.40
codegen_flags: <defaults>
</compile_context>

<pallas_src>
import jax
import jax.numpy as jnp
from jax.experimental import pallas as pl
from jax.experimental.pallas import tpu as pltpu


def _up_kernel(x_ref, r_ref, o_ref):
    """2x nearest-neighbor upsample of one row-slab.

    x_ref: (rows, W)   input rows (one row = one spatial row of one (n, c) plane)
    r_ref: (W, 2W)     constant 0/1 column-duplication matrix, R[j, q] = (j == q // 2)
    o_ref: (rows, 4W)  output row r = [coldup(x[r]) | coldup(x[r])]; in HBM this is
                       exactly the (.., 2H, 2W) nearest-upsampled layout (the row-pair
                       interleave is absorbed into the lane dim), so no cross-sublane
                       interleave or output-sized temporary is needed.
    """
    x = x_ref[...]
    out_dt = o_ref.dtype

    # Column duplication: z[r, 2j+b] = x[r, j] via the constant selection matmul.
    # (TODO(synk): on v5e with f32 and very large W, a non-MXU lane interleave such as
    #  jnp.repeat(x, 2, axis=-1) would dodge the bf16-only-MXU roofline.)
    if jnp.dtype(out_dt) == jnp.dtype(jnp.bfloat16):
        # One non-zero per output column of R -> bf16 result is already exact for bf16
        # inputs; halves the intermediate's footprint and skips a full-block cast.
        z = jnp.dot(x, r_ref[...], preferred_element_type=jnp.bfloat16)
    else:
        # f32 path: f32 accumulation.  Mosaic's default f32 MXU path reproduced the
        # selected inputs to <=1e-6 in the sandbox run; precision=HIGHEST could be
        # forced here if bit-exactness must be guaranteed.
        z = jnp.dot(x, r_ref[...], preferred_element_type=jnp.float32).astype(out_dt)

    w2 = z.shape[-1]
    # Row duplication == two static lane-offset stores of the same value.
    o_ref[:, 0:w2] = z
    o_ref[:, w2:2 * w2] = z


def _vmem_limit_bytes():
    """Generation-aware VMEM request: ~3/4 of per-core VMEM, capped at 100 MiB.
    v5e/v6e (128 MiB) -> 96 MiB; v7x (64 MiB) -> 48 MiB; falls back to 48 MiB if the
    hardware query is unavailable (safe on every generation)."""
    cap = 64 * 1024 * 1024
    try:
        cap = int(pltpu.get_tpu_info().vmem_capacity_bytes)
    except Exception:
        pass
    return min((cap * 3) // 4, 100 * 1024 * 1024)


def _pick_rows_per_block(total_rows, w, itemsize, vmem_limit_bytes, r_bytes):
    """Rows of the flattened (N*C*H, W) input per grid step.

    Purely VMEM-driven: row and column duplication are row-local, so any row-chunk is
    valid (no plane-alignment constraint, partial last blocks are safe).  Sized so
      2x(in + out) double buffers + x value + matmul result + 2x constant R + margin
    fits under the requested VMEM limit, rounded to the sublane packing multiple, with
    an even step count (>= 2) when there is enough data so v7x's two TensorCores get
    balanced work.
    """
    sub = 8 * max(1, 4 // itemsize)                 # 8 (f32) / 16 (bf16) / 32 (int8)
    if total_rows <= sub:
        return total_rows                           # full-extent block: always legal

    # Per-row VMEM: 2x input buf + 2x output buf (4W wide) + x value + f32 matmul result.
    bytes_per_row = (2 * w + 2 * 4 * w + w) * itemsize + 2 * w * 4
    budget = vmem_limit_bytes - 2 * r_bytes - (4 << 20)   # margin for compiler scratch
    rows_cap = max(sub, (budget // bytes_per_row) // sub * sub)

    # Per-step floor: keep >= ~1 MiB of in+out HBM traffic per step so the ~0.35us
    # fixed per-step overhead stays in the noise.
    rows_floor = max(sub, (1 << 20) // (5 * w * itemsize))

    if total_rows <= rows_cap and total_rows < 2 * rows_floor:
        # Tiny problem: one full-extent block beats paying per-step overhead twice.
        return total_rows

    rows = min(rows_cap, total_rows)
    steps = max(2, pl.cdiv(total_rows, rows))
    if steps % 2:
        steps += 1                                  # even split across v7x's 2 TCs
    rows = min(rows_cap, sub * pl.cdiv(pl.cdiv(total_rows, steps), sub))
    return max(sub, rows)


@jax.jit
def up_forward(x):
    """2x nearest-neighbor upsample of an NCHW tensor via a Pallas TPU kernel."""
    n, c, h, w = x.shape
    dt = x.dtype
    itemsize = jnp.dtype(dt).itemsize
    total_rows = n * c * h

    # Constant column-duplication matrix R[j, q] = (j == q // 2): built once in the
    # wrapper, passed with a constant index_map so it is DMA'd once and stays
    # VMEM-resident across grid steps (no per-step iota/compare/cast work).
    rj = jnp.arange(w, dtype=jnp.int32)[:, None]
    rq = jnp.arange(2 * w, dtype=jnp.int32)[None, :] // 2
    r_mat = (rj == rq).astype(dt)
    r_bytes = w * 2 * w * itemsize

    vmem_limit = _vmem_limit_bytes()
    rows = _pick_rows_per_block(total_rows, w, itemsize, vmem_limit, r_bytes)
    grid = (pl.cdiv(total_rows, rows),)

    # Row-slab views: input (N*C*H, W); output (N*C*H, 4W).  The 4W lane dim packs the
    # row-duplicate pair next to the column-duplicated row, so the output's row-major
    # layout is exactly (N, C, 2H, 2W), every block DMA is one contiguous transfer, and
    # the output lane width is 4W (lane-dense for W >= 32).
    x2 = x.reshape(total_rows, w)

    bytes_accessed = (5 * total_rows * w + 2 * w * w) * itemsize   # HBM-bound op
    flops = 4 * total_rows * w * w                                 # one small 0/1 matmul

    out2 = pl.pallas_call(
        _up_kernel,
        out_shape=jax.ShapeDtypeStruct((total_rows, 4 * w), dt),
        grid_spec=pltpu.PrefetchScalarGridSpec(
            num_scalar_prefetch=0,
            grid=grid,
            in_specs=[
                pl.BlockSpec((rows, w), lambda i: (i, 0)),
                pl.BlockSpec((w, 2 * w), lambda i: (0, 0)),   # constant, VMEM-resident
            ],
            out_specs=pl.BlockSpec((rows, 4 * w), lambda i: (i, 0)),
        ),
        compiler_params=pltpu.CompilerParams(
            dimension_semantics=("parallel",),
            vmem_limit_bytes=vmem_limit,
        ),
        cost_estimate=pl.CostEstimate(
            flops=flops, transcendentals=0, bytes_accessed=bytes_accessed),
    )(x2, r_mat)

    return out2.reshape(n, c, 2 * h, 2 * w)


if __name__ == "__main__":
    key = jax.random.PRNGKey(0)
    N, C, H, W = 2, 4, 16, 16
    x = jax.random.normal(key, (N, C, H, W), dtype=jnp.float32)

    out = jax.block_until_ready(up_forward(x))

    # Reference: nearest-neighbor 2x upsample (what nn.Upsample(scale_factor=2) does).
    ref = jnp.repeat(jnp.repeat(x, 2, axis=2), 2, axis=3)

    assert out.shape == (N, C, 2 * H, 2 * W), out.shape
    assert out.dtype == x.dtype, out.dtype
    assert jnp.allclose(out, ref, atol=1e-6), "mismatch vs nearest-upsample reference"

    print("KERNEL_OK")
</pallas_src>

<mosaic_0001>
module attributes {stable_mosaic.version = 11 : i64} {
  func.func @_up_kernel(%arg0: i32, %arg1: memref<128x16xf32, #tpu.memory_space<vmem>>, %arg2: memref<16x32xf32, #tpu.memory_space<vmem>>, %arg3: memref<128x64xf32, #tpu.memory_space<vmem>>) attributes {dimension_semantics = [#tpu.dimension_semantics<parallel>], iteration_bounds = array<i64: 1>, scalar_prefetch = 0 : i64, scratch_operands = 0 : i64, tpu.core_type = #tpu.core_type<tc>, window_params = [{transform_indices = @transform_0, window_bounds = array<i64: 128, 16>}, {pipeline_mode = #tpu.pipeline_mode<synchronous>, transform_indices = @transform_1, window_bounds = array<i64: 16, 32>}, {transform_indices = @transform_2, window_bounds = array<i64: 128, 64>}]} {
    %c0 = arith.constant 0 : index
    %c0_0 = arith.constant 0 : index
    %0 = vector.load %arg1[%c0, %c0_0] : memref<128x16xf32, #tpu.memory_space<vmem>>, vector<128x16xf32>
    %c0_1 = arith.constant 0 : index
    %c0_2 = arith.constant 0 : index
    %1 = vector.load %arg2[%c0_1, %c0_2] : memref<16x32xf32, #tpu.memory_space<vmem>>, vector<16x32xf32>
    %cst = arith.constant dense<0.000000e+00> : vector<128x32xf32>
    %2 = tpu.matmul %0, %1, %cst {dimension_numbers = #tpu.dot_dimension_numbers<[1], [0], [0], [1], [0, 0, 1, 1], [], []>} : vector<128x16xf32>, vector<16x32xf32>, vector<128x32xf32> -> vector<128x32xf32>
    %c0_3 = arith.constant 0 : index
    %c0_4 = arith.constant 0 : index
    %3 = vector.load %arg3[%c0_3, %c0_4] : memref<128x64xf32, #tpu.memory_space<vmem>>, vector<128x32xf32>
    tpu.vector_store %arg3[%c0_3, %c0_4], %2 {strides = array<i32>} : memref<128x64xf32, #tpu.memory_space<vmem>>, vector<128x32xf32>,
    %c0_5 = arith.constant 0 : index
    %c32 = arith.constant 32 : index
    %4 = vector.load %arg3[%c0_5, %c32] : memref<128x64xf32, #tpu.memory_space<vmem>>, vector<128x32xf32>
    tpu.vector_store %arg3[%c0_5, %c32], %2 {strides = array<i32>} : memref<128x64xf32, #tpu.memory_space<vmem>>, vector<128x32xf32>,
    return
  }
  func.func @transform_0(%arg0: i32) -> (i32, i32) {
    %c0_i32 = arith.constant 0 : i32
    %c0_i32_0 = arith.constant 0 : i32
    return %arg0, %c0_i32 : i32, i32
  }
  func.func @transform_1(%arg0: i32) -> (i32, i32) {
    %c0_i32 = arith.constant 0 : i32
    %c0_i32_0 = arith.constant 0 : i32
    %c0_i32_1 = arith.constant 0 : i32
    return %c0_i32, %c0_i32_0 : i32, i32
  }
  func.func @transform_2(%arg0: i32) -> (i32, i32) {
    %c0_i32 = arith.constant 0 : i32
    %c0_i32_0 = arith.constant 0 : i32
    return %arg0, %c0_i32 : i32, i32
  }
}

</mosaic_0001>

<bundles_post_ra>
// kernel: up_forward.1
= control target key start
LH: loop header
LB: loop body
LE: loop exit
PB: predicated region body
PF: predicated region fallthrough
CT: control target
= control target key end

     0   :  { %7 = vsyncpa [#allocation3], 0  ;;  %s432_s9 = smov [#allocation2]   ;;  %s620_s0 = inlined_call_operand.hbm [shape: f32[128,16], index: 0, kind: input, shape index: {}]   ;;  %s621_s1 = inlined_call_operand.vmem [shape: f32[16,32], index: 1, kind: input, shape index: {}]   ;;  %s622_s2 = inlined_call_operand.vmem [shape: f32[128,64], index: 2, kind: output, shape index: {}]  }
   0x1   :  { %s13_s10 = sshll.u32 %s432_s9, 4  ;;  %s14_s10 = int_to_ptr.vmem [resolvable:$true] %s13_s10 }
   0x2   :  { %s418_s11 = scalar_lea.vmem %s14_s10, 2048  ;;  %p423_p1 = scmp.lt.s32.totalorder %s14_s10, %s14_s10 }
   0x3   :  { %p419_p0 = scmp.ne.s32.totalorder %s14_s10, %s418_s11  ;;  %p424_p2 = scmp.lt.s32.totalorder %s418_s11, %s418_s11 }
   0x5   :  { %p425_p3 = por %p424_p2, %p423_p1 }
   0x7   :  { %p426_p4 = pnand %p425_p3, %p419_p0 }
   0x9   :  { %429 = shalt.err (!%p426_p4)
}
   0xa   :  { %s433_s12 = smov 128   ;;  %s434_s13 = smov 8  }
   0xb   :  { %19 = dma.hbm_to_vmem [thread:$0]  %s620_s0, 2048, %s14_s10, [#allocation3], %s433_s12, %s433_s12, %s434_s13  }
   0xc   :  { %430 = dma.done.wait [#allocation3], 2048  }
   0xd   :  { %431 = vsyncadd [#allocation3], 4294965248  ;;  %v42_v0 = vld [vmem:[%s621_s1 + $0x8] sm:$0xff]  ;;  %v41_v1 = vld [vmem:[%s621_s1] sm:$0xff]  ;;  %vm43_vm0 = vcmask 130048   ;;  %vm237_vm1 = vcmask 261120  }
   0xe   :  { %374 = vmatprep.subr.mxu0 %v42_v0  ;;  %402 = vmatprep.subr.mxu1 %v42_v0  ;;  %v25_v2 = vld [vmem:[#allocation2] sm:$0xff]  ;;  %v26_v4 = vld [vmem:[#allocation2 + $0x8] sm:$0xff]  ;;  %v27_v6 = vld [vmem:[#allocation2 + $0x10] sm:$0xff]  ;;  %s435_s22 = smov 32   ;;  %vm318_vm2 = vcmask 523520  }
   0xf   :  { %375 = vmatpush3.msra.mxu0 %v42_v0  ;;  %404 = vmatpush3.msra.mxu1 %v42_v0  ;;  %v33_v3 = vld [vmem:[#allocation2 + $0x40] sm:$0xff]  ;;  %v34_v5 = vld [vmem:[#allocation2 + $0x48] sm:$0xff]  ;;  %v35_v7 = vld [vmem:[#allocation2 + $0x50] sm:$0xff] }
  0x10   :  { %376 = vmatprep.subr.mxu0 %v41_v1  ;;  %403 = vmatprep.subr.mxu1 %v41_v1  ;;  %v28_v8 = vld [vmem:[#allocation2 + $0x18] sm:$0xff]  ;;  %v29_v10 = vld [vmem:[#allocation2 + $0x20] sm:$0xff]  ;;  %v30_v12 = vld [vmem:[#allocation2 + $0x28] sm:$0xff] }
  0x11   :  { %377 = vmatpush3.msra.mxu0 %v41_v1  ;;  %405 = vmatpush3.msra.mxu1 %v41_v1  ;;  %v36_v9 = vld [vmem:[#allocation2 + $0x58] sm:$0xff]  ;;  %v37_v11 = vld [vmem:[#allocation2 + $0x60] sm:$0xff]  ;;  %v38_v13 = vld [vmem:[#allocation2 + $0x68] sm:$0xff] }
  0x12   :  { %378 = vmatprep.mubr.msk.f32.mxu0 %vm43_vm0, %v25_v2  ;;  %390 = vmatprep.mubr.msk.f32.mxu1 %vm43_vm0, %v33_v3  ;;  %v31_v14 = vld [vmem:[#allocation2 + $0x30] sm:$0xff]  ;;  %v32_v16 = vld [vmem:[#allocation2 + $0x38] sm:$0xff] }
  0x13   :  { %379 = vmatmul.mubr.msk.f32.vlgmr.msra.gmra.mxu0 %vm43_vm0, %v26_v4  ;;  %391 = vmatmul.mubr.msk.f32.vlgmr.msra.gmra.mxu1 %vm43_vm0, %v34_v5  ;;  %v39_v15 = vld [vmem:[#allocation2 + $0x70] sm:$0xff]  ;;  %v40_v17 = vld [vmem:[#allocation2 + $0x78] sm:$0xff] }
  0x14   :  { %381 = vmatprep.mubr.msk.f32.mxu0 %vm43_vm0, %v27_v6  ;;  %393 = vmatprep.mubr.msk.f32.mxu1 %vm43_vm0, %v35_v7 }
  0x17   :  { %382 = vmatmul.mubr.msk.f32.gmra.mxu0 %vm43_vm0, %v28_v8  ;;  %394 = vmatmul.mubr.msk.f32.gmra.mxu1 %vm43_vm0, %v36_v9 }
  0x18   :  { %384 = vmatprep.mubr.msk.f32.mxu0 %vm43_vm0, %v29_v10  ;;  %396 = vmatprep.mubr.msk.f32.mxu1 %vm43_vm0, %v37_v11 }
  0x1b   :  { %385 = vmatmul.mubr.msk.f32.gmra.mxu0 %vm43_vm0, %v30_v12  ;;  %397 = vmatmul.mubr.msk.f32.gmra.mxu1 %vm43_vm0, %v38_v13 }
  0x1c   :  { %387 = vmatprep.mubr.msk.f32.mxu0 %vm43_vm0, %v31_v14  ;;  %399 = vmatprep.mubr.msk.f32.mxu1 %vm43_vm0, %v39_v15 }
  0x1f   :  { %388 = vmatmul.mubr.msk.f32.gmra.mxu0 %vm43_vm0, %v32_v16  ;;  %400 = vmatmul.mubr.msk.f32.gmra.mxu1 %vm43_vm0, %v40_v17 }
  0xd3   :  { %v380_v18 = vpop.f32.mrf.mxu0  ;;  %v392_v19 = vpop.f32.mrf.mxu1 }
  0xd4   :  { %239 = vst.msk [vmem:[%s622_s2 + $0x8] sm:$0xff] %vm237_vm1, %v380_v18  ;;  %247 = vst.msk [vmem:[%s622_s2 + $0x48] sm:$0xff] %vm237_vm1, %v392_v19  ;;  %288 = vrot.lane.b32.xlu1 %v392_v19, %s435_s22  ;;  %272 = vrot.lane.b32.xlu0 %v380_v18, %s435_s22 }
  0xd5   :  { %v158_v20 = vpop.f32.mrf.mxu0  ;;  %v198_v21 = vpop.f32.mrf.mxu1 }
  0xd6   :  { %238 = vst.msk [vmem:[%s622_s2] sm:$0xff] %vm237_vm1, %v158_v20  ;;  %246 = vst.msk [vmem:[%s622_s2 + $0x40] sm:$0xff] %vm237_vm1, %v198_v21 }
  0xd7   :  { %v383_v22 = vpop.f32.mrf.mxu0  ;;  %v395_v23 = vpop.f32.mrf.mxu1 }
  0xd8   :  { %241 = vst.msk [vmem:[%s622_s2 + $0x18] sm:$0xff] %vm237_vm1, %v383_v22  ;;  %270 = vrot.lane.b32.xlu0 %v158_v20, %s435_s22  ;;  %276 = vrot.lane.b32.xlu1 %v383_v22, %s435_s22  ;;  %249 = vst.msk [vmem:[%s622_s2 + $0x58] sm:$0xff] %vm237_vm1, %v395_v23 }
  0xd9   :  { %v168_v24 = vpop.f32.mrf.mxu0  ;;  %v208_v25 = vpop.f32.mrf.mxu1 }
  0xda   :  { %240 = vst.msk [vmem:[%s622_s2 + $0x10] sm:$0xff] %vm237_vm1, %v168_v24  ;;  %248 = vst.msk [vmem:[%s622_s2 + $0x50] sm:$0xff] %vm237_vm1, %v208_v25 }
  0xdb   :  { %v386_v26 = vpop.f32.mrf.mxu0  ;;  %v398_v27 = vpop.f32.mrf.mxu1 }
  0xdc   :  { %286 = vrot.lane.b32.xlu0 %v198_v21, %s435_s22  ;;  %292 = vrot.lane.b32.xlu1 %v395_v23, %s435_s22  ;;  %243 = vst.msk [vmem:[%s622_s2 + $0x28] sm:$0xff] %vm237_vm1, %v386_v26  ;;  %251 = vst.msk [vmem:[%s622_s2 + $0x68] sm:$0xff] %vm237_vm1, %v398_v27 }
  0xdd   :  { %v178_v28 = vpop.f32.mrf.mxu0  ;;  %v218_v29 = vpop.f32.mrf.mxu1 }
  0xde   :  { %242 = vst.msk [vmem:[%s622_s2 + $0x20] sm:$0xff] %vm237_vm1, %v178_v28  ;;  %250 = vst.msk [vmem:[%s622_s2 + $0x60] sm:$0xff] %vm237_vm1, %v218_v29 }
  0xdf   :  { %v389_v30 = vpop.f32.mrf.mxu0  ;;  %v401_v31 = vpop.f32.mrf.mxu1 }
  0xe0   :  { %290 = vrot.lane.b32.xlu0 %v208_v25, %s435_s22  ;;  %274 = vrot.lane.b32.xlu1 %v168_v24, %s435_s22  ;;  %245 = vst.msk [vmem:[%s622_s2 + $0x38] sm:$0xff] %vm237_vm1, %v389_v30  ;;  %253 = vst.msk [vmem:[%s622_s2 + $0x78] sm:$0xff] %vm237_vm1, %v401_v31 }
  0xe1   :  { %v188_v32 = vpop.f32.mrf.mxu0  ;;  %v228_v33 = vpop.f32.mrf.mxu1 }
  0xe2   :  { %244 = vst.msk [vmem:[%s622_s2 + $0x30] sm:$0xff] %vm237_vm1, %v188_v32  ;;  %252 = vst.msk [vmem:[%s622_s2 + $0x70] sm:$0xff] %vm237_vm1, %v228_v33 }
  0xe4   :  { %280 = vrot.lane.b32.xlu1 %v386_v26, %s435_s22  ;;  %278 = vrot.lane.b32.xlu0 %v178_v28, %s435_s22 }
  0xe8   :  { %296 = vrot.lane.b32.xlu1 %v398_v27, %s435_s22  ;;  %294 = vrot.lane.b32.xlu0 %v218_v29, %s435_s22 }
  0xec   :  { %284 = vrot.lane.b32.xlu1 %v389_v30, %s435_s22  ;;  %282 = vrot.lane.b32.xlu0 %v188_v32, %s435_s22 }
  0xf0   :  { %300 = vrot.lane.b32.xlu1 %v401_v31, %s435_s22  ;;  %298 = vrot.lane.b32.xlu0 %v228_v33, %s435_s22 }
 0x146   :  { %v289_v34 = vpop.permute.xlu1 %288  ;;  %v273_v35 = vpop.permute.xlu0 %272 }
 0x147   :  { %328 = vst.msk [vmem:[%s622_s2 + $0x48] sm:$0xff] %vm318_vm2, %v289_v34  ;;  %320 = vst.msk [vmem:[%s622_s2 + $0x8] sm:$0xff] %vm318_vm2, %v273_v35 }
 0x14a   :  { %v271_v36 = vpop.permute.xlu0 %270  ;;  %v277_v37 = vpop.permute.xlu1 %276 }
 0x14b   :  { %319 = vst.msk [vmem:[%s622_s2] sm:$0xff] %vm318_vm2, %v271_v36  ;;  %322 = vst.msk [vmem:[%s622_s2 + $0x18] sm:$0xff] %vm318_vm2, %v277_v37 }
 0x14e   :  { %v287_v38 = vpop.permute.xlu0 %286  ;;  %v293_v39 = vpop.permute.xlu1 %292 }
 0x14f   :  { %327 = vst.msk [vmem:[%s622_s2 + $0x40] sm:$0xff] %vm318_vm2, %v287_v38  ;;  %330 = vst.msk [vmem:[%s622_s2 + $0x58] sm:$0xff] %vm318_vm2, %v293_v39 }
 0x152   :  { %v291_v40 = vpop.permute.xlu0 %290  ;;  %v275_v41 = vpop.permute.xlu1 %274 }
 0x153   :  { %329 = vst.msk [vmem:[%s622_s2 + $0x50] sm:$0xff] %vm318_vm2, %v291_v40  ;;  %321 = vst.msk [vmem:[%s622_s2 + $0x10] sm:$0xff] %vm318_vm2, %v275_v41 }
 0x156   :  { %v281_v42 = vpop.permute.xlu1 %280  ;;  %v279_v43 = vpop.permute.xlu0 %278 }
 0x157   :  { %324 = vst.msk [vmem:[%s622_s2 + $0x28] sm:$0xff] %vm318_vm2, %v281_v42  ;;  %323 = vst.msk [vmem:[%s622_s2 + $0x20] sm:$0xff] %vm318_vm2, %v279_v43 }
 0x15a   :  { %v297_v44 = vpop.permute.xlu1 %296  ;;  %v295_v45 = vpop.permute.xlu0 %294 }
 0x15b   :  { %332 = vst.msk [vmem:[%s622_s2 + $0x68] sm:$0xff] %vm318_vm2, %v297_v44  ;;  %331 = vst.msk [vmem:[%s622_s2 + $0x60] sm:$0xff] %vm318_vm2, %v295_v45 }
 0x15e   :  { %v285_v46 = vpop.permute.xlu1 %284  ;;  %v283_v47 = vpop.permute.xlu0 %282 }
 0x15f   :  { %326 = vst.msk [vmem:[%s622_s2 + $0x38] sm:$0xff] %vm318_vm2, %v285_v46  ;;  %325 = vst.msk [vmem:[%s622_s2 + $0x30] sm:$0xff] %vm318_vm2, %v283_v47 }
 0x162   :  { %v301_v48 = vpop.permute.xlu1 %300  ;;  %v299_v49 = vpop.permute.xlu0 %298 }
 0x163   :  { %334 = vst.msk [vmem:[%s622_s2 + $0x78] sm:$0xff] %vm318_vm2, %v301_v48  ;;  %333 = vst.msk [vmem:[%s622_s2 + $0x70] sm:$0xff] %vm318_vm2, %v299_v49 }
 0x164   :  { %339 = vsyncpa [#allocation3], 1 }

</bundles_post_ra>
